<compile_context>
chip_gen: v7x
topology: tpu7x:2x2x1
jax: 0.10.0
libtpu: 0.0.40
codegen_flags: <defaults>
</compile_context>

<pallas_src>
import jax
import jax.numpy as jnp
import numpy as np
from jax.experimental import pallas as pl
from jax.experimental.pallas import tpu as pltpu


def _round_up(n, m):
    return ((n + m - 1) // m) * m


def _rnn_kernel(x_ref, w1x_ref, w1h_ref, b1_ref, w2x_ref, w2h_ref, b2_ref,
                w3_ref, b3_ref, o_ref):
    # x_ref: (block_b, T, IN); weights full; b3_ref: (1,1) in SMEM; o_ref: (1, block_b)
    block_b, T, _ = x_ref.shape
    H1 = w1h_ref.shape[0]
    H2 = w2h_ref.shape[0]

    w1x = w1x_ref[...]
    w1h = w1h_ref[...]
    b1 = b1_ref[...]
    w2x = w2x_ref[...]
    w2h = w2h_ref[...]
    b2 = b2_ref[...]

    h1 = jnp.zeros((block_b, H1), jnp.float32)
    h2 = jnp.zeros((block_b, H2), jnp.float32)

    # T is small and static: unroll the recurrence (indices stay static).
    for t in range(T):
        x_t = x_ref[:, t, :]                                       # (block_b, IN)
        h1 = jnp.tanh(
            jnp.dot(x_t, w1x, preferred_element_type=jnp.float32)
            + jnp.dot(h1, w1h, preferred_element_type=jnp.float32)
            + b1)
        h2 = jnp.tanh(
            jnp.dot(h1, w2x, preferred_element_type=jnp.float32)
            + jnp.dot(h2, w2h, preferred_element_type=jnp.float32)
            + b2)

    # dropout: identity (eval mode)
    # reg on the last timestep, lane-dense: (1, H2) contracted with (block_b, H2)
    y = jnp.einsum('oh,bh->ob', w3_ref[...], h2,
                   preferred_element_type=jnp.float32)             # (1, block_b)
    o_ref[...] = y + b3_ref[0, 0]


def regression_rnn_forward(x, params):
    """x: (B, T, input_size) float32 -> (B,) float32 (eval-mode forward)."""
    w1x, w1h, b1, w2x, w2h, b2, w3, b3 = params
    B, T, IN = x.shape
    H1 = w1h.shape[0]
    H2 = w2h.shape[0]

    # Batch tiling: whole (sublane-padded) batch per step when small, 128-wide
    # lane-dense tiles when large (keeps the out-block rule satisfied).
    if B >= 128:
        block_b = 128
        B_pad = _round_up(B, 128)
    else:
        block_b = _round_up(B, 8)
        B_pad = block_b
    if B_pad != B:
        x = jnp.pad(x, ((0, B_pad - B), (0, 0), (0, 0)))
    grid = (B_pad // block_b,)

    flops = 2 * B_pad * T * (IN * H1 + H1 * H1 + H1 * H2 + H2 * H2) + 2 * B_pad * H2
    transcendentals = B_pad * T * (H1 + H2)
    bytes_accessed = 4 * (B_pad * T * IN + IN * H1 + H1 * H1 + H1
                          + H1 * H2 + H2 * H2 + H2 + H2 + 1 + B_pad)

    out = pl.pallas_call(
        _rnn_kernel,
        out_shape=jax.ShapeDtypeStruct((1, B_pad), jnp.float32),
        grid_spec=pltpu.PrefetchScalarGridSpec(
            num_scalar_prefetch=0,
            grid=grid,
            in_specs=[
                pl.BlockSpec((block_b, T, IN), lambda i: (i, 0, 0)),
                pl.BlockSpec((IN, H1), lambda i: (0, 0)),
                pl.BlockSpec((H1, H1), lambda i: (0, 0)),
                pl.BlockSpec((1, H1), lambda i: (0, 0)),
                pl.BlockSpec((H1, H2), lambda i: (0, 0)),
                pl.BlockSpec((H2, H2), lambda i: (0, 0)),
                pl.BlockSpec((1, H2), lambda i: (0, 0)),
                pl.BlockSpec((1, H2), lambda i: (0, 0)),
                pl.BlockSpec(memory_space=pltpu.MemorySpace.SMEM),   # b3 scalar
            ],
            out_specs=pl.BlockSpec((1, block_b), lambda i: (0, i)),
        ),
        compiler_params=pltpu.CompilerParams(
            dimension_semantics=("parallel",),
        ),
        cost_estimate=pl.CostEstimate(
            flops=int(flops),
            transcendentals=int(transcendentals),
            bytes_accessed=int(bytes_accessed),
        ),
    )(x, w1x, w1h, b1, w2x, w2h, b2, w3, b3)
    return out[0, :B]


def init_params(key, input_size, hidden_size_1, hidden_size_2):
    """PyTorch-style init: nn.RNN params ~ U(-1/sqrt(H), 1/sqrt(H)), Linear ~ U(-1/sqrt(fan_in))."""
    ks = jax.random.split(key, 10)

    def u(k, shape, bound):
        return jax.random.uniform(k, shape, jnp.float32, -bound, bound)

    bd1 = 1.0 / np.sqrt(hidden_size_1)
    bd2 = 1.0 / np.sqrt(hidden_size_2)

    # rnn1: stored as transposed PyTorch weights (x @ W_ih^T, h @ W_hh^T), biases summed.
    w1x = u(ks[0], (input_size, hidden_size_1), bd1)
    w1h = u(ks[1], (hidden_size_1, hidden_size_1), bd1)
    b1 = u(ks[2], (1, hidden_size_1), bd1) + u(ks[3], (1, hidden_size_1), bd1)
    # rnn2
    w2x = u(ks[4], (hidden_size_1, hidden_size_2), bd2)
    w2h = u(ks[5], (hidden_size_2, hidden_size_2), bd2)
    b2 = u(ks[6], (1, hidden_size_2), bd2) + u(ks[7], (1, hidden_size_2), bd2)
    # reg: Linear(hidden_size_2, 1); weight kept as a (1, H2) row, bias as (1,1).
    w3 = u(ks[8], (1, hidden_size_2), bd2)
    b3 = u(ks[9], (1, 1), bd2)
    return (w1x, w1h, b1, w2x, w2h, b2, w3, b3)


def reference_forward(x, params):
    """Pure-JAX reference mirroring the PyTorch forward (eval mode)."""
    w1x, w1h, b1, w2x, w2h, b2, w3, b3 = params
    B, T, _ = x.shape
    H1 = w1h.shape[0]
    H2 = w2h.shape[0]
    h1 = jnp.zeros((B, H1), jnp.float32)
    h2 = jnp.zeros((B, H2), jnp.float32)
    for t in range(T):
        h1 = jnp.tanh(x[:, t, :] @ w1x + h1 @ w1h + b1)
        h2 = jnp.tanh(h1 @ w2x + h2 @ w2h + b2)
    y = h2 @ w3.T + b3          # (B, 1)
    return y[:, 0]              # matches .squeeze() for B > 1


if __name__ == "__main__":
    key = jax.random.PRNGKey(0)
    k_x, k_p = jax.random.split(key)

    B, T = 2, 8
    input_size, hidden_size_1, hidden_size_2 = 3, 32, 32

    x = jax.random.normal(k_x, (B, T, input_size), dtype=jnp.float32)
    params = init_params(k_p, input_size, hidden_size_1, hidden_size_2)

    out = jax.block_until_ready(regression_rnn_forward(x, params))
    ref = jax.block_until_ready(reference_forward(x, params))
    np.testing.assert_allclose(np.asarray(out), np.asarray(ref), rtol=1e-5, atol=1e-5)

    print("KERNEL_OK")
</pallas_src>

<mosaic_0001>
module attributes {stable_mosaic.version = 11 : i64} {
  func.func @_rnn_kernel(%arg0: i32, %arg1: memref<8x8x3xf32, #tpu.memory_space<vmem>>, %arg2: memref<3x32xf32, #tpu.memory_space<vmem>>, %arg3: memref<32x32xf32, #tpu.memory_space<vmem>>, %arg4: memref<1x32xf32, #tpu.memory_space<vmem>>, %arg5: memref<32x32xf32, #tpu.memory_space<vmem>>, %arg6: memref<32x32xf32, #tpu.memory_space<vmem>>, %arg7: memref<1x32xf32, #tpu.memory_space<vmem>>, %arg8: memref<1x32xf32, #tpu.memory_space<vmem>>, %arg9: memref<1x1xf32, #tpu.memory_space<smem>>, %arg10: memref<1x8xf32, #tpu.memory_space<vmem>>) attributes {dimension_semantics = [#tpu.dimension_semantics<parallel>], iteration_bounds = array<i64: 1>, scalar_prefetch = 0 : i64, scratch_operands = 0 : i64, tpu.core_type = #tpu.core_type<tc>, window_params = [{transform_indices = @transform_0, window_bounds = array<i64: 8, 8, 3>}, {pipeline_mode = #tpu.pipeline_mode<synchronous>, transform_indices = @transform_1, window_bounds = array<i64: 3, 32>}, {pipeline_mode = #tpu.pipeline_mode<synchronous>, transform_indices = @transform_2, window_bounds = array<i64: 32, 32>}, {pipeline_mode = #tpu.pipeline_mode<synchronous>, transform_indices = @transform_3, window_bounds = array<i64: 1, 32>}, {pipeline_mode = #tpu.pipeline_mode<synchronous>, transform_indices = @transform_4, window_bounds = array<i64: 32, 32>}, {pipeline_mode = #tpu.pipeline_mode<synchronous>, transform_indices = @transform_5, window_bounds = array<i64: 32, 32>}, {pipeline_mode = #tpu.pipeline_mode<synchronous>, transform_indices = @transform_6, window_bounds = array<i64: 1, 32>}, {pipeline_mode = #tpu.pipeline_mode<synchronous>, transform_indices = @transform_7, window_bounds = array<i64: 1, 32>}, {transform_indices = @transform_8, window_bounds = array<i64: 1, 1>}, {transform_indices = @transform_9, window_bounds = array<i64: 1, 8>}]} {
    %c0 = arith.constant 0 : index
    %c0_0 = arith.constant 0 : index
    %0 = vector.load %arg2[%c0, %c0_0] : memref<3x32xf32, #tpu.memory_space<vmem>>, vector<3x32xf32>
    %c0_1 = arith.constant 0 : index
    %c0_2 = arith.constant 0 : index
    %1 = vector.load %arg3[%c0_1, %c0_2] : memref<32x32xf32, #tpu.memory_space<vmem>>, vector<32x32xf32>
    %c0_3 = arith.constant 0 : index
    %c0_4 = arith.constant 0 : index
    %2 = vector.load %arg4[%c0_3, %c0_4] : memref<1x32xf32, #tpu.memory_space<vmem>>, vector<1x32xf32>
    %c0_5 = arith.constant 0 : index
    %c0_6 = arith.constant 0 : index
    %3 = vector.load %arg5[%c0_5, %c0_6] : memref<32x32xf32, #tpu.memory_space<vmem>>, vector<32x32xf32>
    %c0_7 = arith.constant 0 : index
    %c0_8 = arith.constant 0 : index
    %4 = vector.load %arg6[%c0_7, %c0_8] : memref<32x32xf32, #tpu.memory_space<vmem>>, vector<32x32xf32>
    %c0_9 = arith.constant 0 : index
    %c0_10 = arith.constant 0 : index
    %5 = vector.load %arg7[%c0_9, %c0_10] : memref<1x32xf32, #tpu.memory_space<vmem>>, vector<1x32xf32>
    %cst = arith.constant 0.000000e+00 : f32
    %6 = vector.broadcast %cst : f32 to vector<8x32xf32>
    %cst_11 = arith.constant 0.000000e+00 : f32
    %7 = vector.broadcast %cst_11 : f32 to vector<8x32xf32>
    %c0_12 = arith.constant 0 : index
    %c0_13 = arith.constant 0 : index
    %c0_14 = arith.constant 0 : index
    %8 = vector.load %arg1[%c0_12, %c0_13, %c0_14] : memref<8x8x3xf32, #tpu.memory_space<vmem>>, vector<8x1x3xf32>
    %9 = vector.shape_cast %8 : vector<8x1x3xf32> to vector<8x3xf32>
    %cst_15 = arith.constant dense<0.000000e+00> : vector<8x32xf32>
    %10 = tpu.matmul %9, %0, %cst_15 {dimension_numbers = #tpu.dot_dimension_numbers<[1], [0], [0], [1], [0, 0, 1, 1], [], []>} : vector<8x3xf32>, vector<3x32xf32>, vector<8x32xf32> -> vector<8x32xf32>
    %cst_16 = arith.constant dense<0.000000e+00> : vector<8x32xf32>
    %11 = tpu.matmul %6, %1, %cst_16 {dimension_numbers = #tpu.dot_dimension_numbers<[1], [0], [0], [1], [0, 0, 1, 1], [], []>} : vector<8x32xf32>, vector<32x32xf32>, vector<8x32xf32> -> vector<8x32xf32>
    %12 = arith.addf %10, %11 : vector<8x32xf32>
    %13 = vector.broadcast %2 : vector<1x32xf32> to vector<8x32xf32>
    %14 = arith.addf %12, %13 : vector<8x32xf32>
    %15 = math.tanh %14 : vector<8x32xf32>
    %cst_17 = arith.constant dense<0.000000e+00> : vector<8x32xf32>
    %16 = tpu.matmul %15, %3, %cst_17 {dimension_numbers = #tpu.dot_dimension_numbers<[1], [0], [0], [1], [0, 0, 1, 1], [], []>} : vector<8x32xf32>, vector<32x32xf32>, vector<8x32xf32> -> vector<8x32xf32>
    %cst_18 = arith.constant dense<0.000000e+00> : vector<8x32xf32>
    %17 = tpu.matmul %7, %4, %cst_18 {dimension_numbers = #tpu.dot_dimension_numbers<[1], [0], [0], [1], [0, 0, 1, 1], [], []>} : vector<8x32xf32>, vector<32x32xf32>, vector<8x32xf32> -> vector<8x32xf32>
    %18 = arith.addf %16, %17 : vector<8x32xf32>
    %19 = vector.broadcast %5 : vector<1x32xf32> to vector<8x32xf32>
    %20 = arith.addf %18, %19 : vector<8x32xf32>
    %21 = math.tanh %20 : vector<8x32xf32>
    %c0_19 = arith.constant 0 : index
    %c1 = arith.constant 1 : index
    %c0_20 = arith.constant 0 : index
    %22 = vector.load %arg1[%c0_19, %c1, %c0_20] : memref<8x8x3xf32, #tpu.memory_space<vmem>>, vector<8x1x3xf32>
    %23 = vector.shape_cast %22 : vector<8x1x3xf32> to vector<8x3xf32>
    %cst_21 = arith.constant dense<0.000000e+00> : vector<8x32xf32>
    %24 = tpu.matmul %23, %0, %cst_21 {dimension_numbers = #tpu.dot_dimension_numbers<[1], [0], [0], [1], [0, 0, 1, 1], [], []>} : vector<8x3xf32>, vector<3x32xf32>, vector<8x32xf32> -> vector<8x32xf32>
    %cst_22 = arith.constant dense<0.000000e+00> : vector<8x32xf32>
    %25 = tpu.matmul %15, %1, %cst_22 {dimension_numbers = #tpu.dot_dimension_numbers<[1], [0], [0], [1], [0, 0, 1, 1], [], []>} : vector<8x32xf32>, vector<32x32xf32>, vector<8x32xf32> -> vector<8x32xf32>
    %26 = arith.addf %24, %25 : vector<8x32xf32>
    %27 = vector.broadcast %2 : vector<1x32xf32> to vector<8x32xf32>
    %28 = arith.addf %26, %27 : vector<8x32xf32>
    %29 = math.tanh %28 : vector<8x32xf32>
    %cst_23 = arith.constant dense<0.000000e+00> : vector<8x32xf32>
    %30 = tpu.matmul %29, %3, %cst_23 {dimension_numbers = #tpu.dot_dimension_numbers<[1], [0], [0], [1], [0, 0, 1, 1], [], []>} : vector<8x32xf32>, vector<32x32xf32>, vector<8x32xf32> -> vector<8x32xf32>
    %cst_24 = arith.constant dense<0.000000e+00> : vector<8x32xf32>
    %31 = tpu.matmul %21, %4, %cst_24 {dimension_numbers = #tpu.dot_dimension_numbers<[1], [0], [0], [1], [0, 0, 1, 1], [], []>} : vector<8x32xf32>, vector<32x32xf32>, vector<8x32xf32> -> vector<8x32xf32>
    %32 = arith.addf %30, %31 : vector<8x32xf32>
    %33 = vector.broadcast %5 : vector<1x32xf32> to vector<8x32xf32>
    %34 = arith.addf %32, %33 : vector<8x32xf32>
    %35 = math.tanh %34 : vector<8x32xf32>
    %c0_25 = arith.constant 0 : index
    %c2 = arith.constant 2 : index
    %c0_26 = arith.constant 0 : index
    %36 = vector.load %arg1[%c0_25, %c2, %c0_26] : memref<8x8x3xf32, #tpu.memory_space<vmem>>, vector<8x1x3xf32>
    %37 = vector.shape_cast %36 : vector<8x1x3xf32> to vector<8x3xf32>
    %cst_27 = arith.constant dense<0.000000e+00> : vector<8x32xf32>
    %38 = tpu.matmul %37, %0, %cst_27 {dimension_numbers = #tpu.dot_dimension_numbers<[1], [0], [0], [1], [0, 0, 1, 1], [], []>} : vector<8x3xf32>, vector<3x32xf32>, vector<8x32xf32> -> vector<8x32xf32>
    %cst_28 = arith.constant dense<0.000000e+00> : vector<8x32xf32>
    %39 = tpu.matmul %29, %1, %cst_28 {dimension_numbers = #tpu.dot_dimension_numbers<[1], [0], [0], [1], [0, 0, 1, 1], [], []>} : vector<8x32xf32>, vector<32x32xf32>, vector<8x32xf32> -> vector<8x32xf32>
    %40 = arith.addf %38, %39 : vector<8x32xf32>
    %41 = vector.broadcast %2 : vector<1x32xf32> to vector<8x32xf32>
    %42 = arith.addf %40, %41 : vector<8x32xf32>
    %43 = math.tanh %42 : vector<8x32xf32>
    %cst_29 = arith.constant dense<0.000000e+00> : vector<8x32xf32>
    %44 = tpu.matmul %43, %3, %cst_29 {dimension_numbers = #tpu.dot_dimension_numbers<[1], [0], [0], [1], [0, 0, 1, 1], [], []>} : vector<8x32xf32>, vector<32x32xf32>, vector<8x32xf32> -> vector<8x32xf32>
    %cst_30 = arith.constant dense<0.000000e+00> : vector<8x32xf32>
    %45 = tpu.matmul %35, %4, %cst_30 {dimension_numbers = #tpu.dot_dimension_numbers<[1], [0], [0], [1], [0, 0, 1, 1], [], []>} : vector<8x32xf32>, vector<32x32xf32>, vector<8x32xf32> -> vector<8x32xf32>
    %46 = arith.addf %44, %45 : vector<8x32xf32>
    %47 = vector.broadcast %5 : vector<1x32xf32> to vector<8x32xf32>
    %48 = arith.addf %46, %47 : vector<8x32xf32>
    %49 = math.tanh %48 : vector<8x32xf32>
    %c0_31 = arith.constant 0 : index
    %c3 = arith.constant 3 : index
    %c0_32 = arith.constant 0 : index
    %50 = vector.load %arg1[%c0_31, %c3, %c0_32] : memref<8x8x3xf32, #tpu.memory_space<vmem>>, vector<8x1x3xf32>
    %51 = vector.shape_cast %50 : vector<8x1x3xf32> to vector<8x3xf32>
    %cst_33 = arith.constant dense<0.000000e+00> : vector<8x32xf32>
    %52 = tpu.matmul %51, %0, %cst_33 {dimension_numbers = #tpu.dot_dimension_numbers<[1], [0], [0], [1], [0, 0, 1, 1], [], []>} : vector<8x3xf32>, vector<3x32xf32>, vector<8x32xf32> -> vector<8x32xf32>
    %cst_34 = arith.constant dense<0.000000e+00> : vector<8x32xf32>
    %53 = tpu.matmul %43, %1, %cst_34 {dimension_numbers = #tpu.dot_dimension_numbers<[1], [0], [0], [1], [0, 0, 1, 1], [], []>} : vector<8x32xf32>, vector<32x32xf32>, vector<8x32xf32> -> vector<8x32xf32>
    %54 = arith.addf %52, %53 : vector<8x32xf32>
    %55 = vector.broadcast %2 : vector<1x32xf32> to vector<8x32xf32>
    %56 = arith.addf %54, %55 : vector<8x32xf32>
    %57 = math.tanh %56 : vector<8x32xf32>
    %cst_35 = arith.constant dense<0.000000e+00> : vector<8x32xf32>
    %58 = tpu.matmul %57, %3, %cst_35 {dimension_numbers = #tpu.dot_dimension_numbers<[1], [0], [0], [1], [0, 0, 1, 1], [], []>} : vector<8x32xf32>, vector<32x32xf32>, vector<8x32xf32> -> vector<8x32xf32>
    %cst_36 = arith.constant dense<0.000000e+00> : vector<8x32xf32>
    %59 = tpu.matmul %49, %4, %cst_36 {dimension_numbers = #tpu.dot_dimension_numbers<[1], [0], [0], [1], [0, 0, 1, 1], [], []>} : vector<8x32xf32>, vector<32x32xf32>, vector<8x32xf32> -> vector<8x32xf32>
    %60 = arith.addf %58, %59 : vector<8x32xf32>
    %61 = vector.broadcast %5 : vector<1x32xf32> to vector<8x32xf32>
    %62 = arith.addf %60, %61 : vector<8x32xf32>
    %63 = math.tanh %62 : vector<8x32xf32>
    %c0_37 = arith.constant 0 : index
    %c4 = arith.constant 4 : index
    %c0_38 = arith.constant 0 : index
    %64 = vector.load %arg1[%c0_37, %c4, %c0_38] : memref<8x8x3xf32, #tpu.memory_space<vmem>>, vector<8x1x3xf32>
    %65 = vector.shape_cast %64 : vector<8x1x3xf32> to vector<8x3xf32>
    %cst_39 = arith.constant dense<0.000000e+00> : vector<8x32xf32>
    %66 = tpu.matmul %65, %0, %cst_39 {dimension_numbers = #tpu.dot_dimension_numbers<[1], [0], [0], [1], [0, 0, 1, 1], [], []>} : vector<8x3xf32>, vector<3x32xf32>, vector<8x32xf32> -> vector<8x32xf32>
    %cst_40 = arith.constant dense<0.000000e+00> : vector<8x32xf32>
    %67 = tpu.matmul %57, %1, %cst_40 {dimension_numbers = #tpu.dot_dimension_numbers<[1], [0], [0], [1], [0, 0, 1, 1], [], []>} : vector<8x32xf32>, vector<32x32xf32>, vector<8x32xf32> -> vector<8x32xf32>
    %68 = arith.addf %66, %67 : vector<8x32xf32>
    %69 = vector.broadcast %2 : vector<1x32xf32> to vector<8x32xf32>
    %70 = arith.addf %68, %69 : vector<8x32xf32>
    %71 = math.tanh %70 : vector<8x32xf32>
    %cst_41 = arith.constant dense<0.000000e+00> : vector<8x32xf32>
    %72 = tpu.matmul %71, %3, %cst_41 {dimension_numbers = #tpu.dot_dimension_numbers<[1], [0], [0], [1], [0, 0, 1, 1], [], []>} : vector<8x32xf32>, vector<32x32xf32>, vector<8x32xf32> -> vector<8x32xf32>
    %cst_42 = arith.constant dense<0.000000e+00> : vector<8x32xf32>
    %73 = tpu.matmul %63, %4, %cst_42 {dimension_numbers = #tpu.dot_dimension_numbers<[1], [0], [0], [1], [0, 0, 1, 1], [], []>} : vector<8x32xf32>, vector<32x32xf32>, vector<8x32xf32> -> vector<8x32xf32>
    %74 = arith.addf %72, %73 : vector<8x32xf32>
    %75 = vector.broadcast %5 : vector<1x32xf32> to vector<8x32xf32>
    %76 = arith.addf %74, %75 : vector<8x32xf32>
    %77 = math.tanh %76 : vector<8x32xf32>
    %c0_43 = arith.constant 0 : index
    %c5 = arith.constant 5 : index
    %c0_44 = arith.constant 0 : index
    %78 = vector.load %arg1[%c0_43, %c5, %c0_44] : memref<8x8x3xf32, #tpu.memory_space<vmem>>, vector<8x1x3xf32>
    %79 = vector.shape_cast %78 : vector<8x1x3xf32> to vector<8x3xf32>
    %cst_45 = arith.constant dense<0.000000e+00> : vector<8x32xf32>
    %80 = tpu.matmul %79, %0, %cst_45 {dimension_numbers = #tpu.dot_dimension_numbers<[1], [0], [0], [1], [0, 0, 1, 1], [], []>} : vector<8x3xf32>, vector<3x32xf32>, vector<8x32xf32> -> vector<8x32xf32>
    %cst_46 = arith.constant dense<0.000000e+00> : vector<8x32xf32>
    %81 = tpu.matmul %71, %1, %cst_46 {dimension_numbers = #tpu.dot_dimension_numbers<[1], [0], [0], [1], [0, 0, 1, 1], [], []>} : vector<8x32xf32>, vector<32x32xf32>, vector<8x32xf32> -> vector<8x32xf32>
    %82 = arith.addf %80, %81 : vector<8x32xf32>
    %83 = vector.broadcast %2 : vector<1x32xf32> to vector<8x32xf32>
    %84 = arith.addf %82, %83 : vector<8x32xf32>
    %85 = math.tanh %84 : vector<8x32xf32>
    %cst_47 = arith.constant dense<0.000000e+00> : vector<8x32xf32>
    %86 = tpu.matmul %85, %3, %cst_47 {dimension_numbers = #tpu.dot_dimension_numbers<[1], [0], [0], [1], [0, 0, 1, 1], [], []>} : vector<8x32xf32>, vector<32x32xf32>, vector<8x32xf32> -> vector<8x32xf32>
    %cst_48 = arith.constant dense<0.000000e+00> : vector<8x32xf32>
    %87 = tpu.matmul %77, %4, %cst_48 {dimension_numbers = #tpu.dot_dimension_numbers<[1], [0], [0], [1], [0, 0, 1, 1], [], []>} : vector<8x32xf32>, vector<32x32xf32>, vector<8x32xf32> -> vector<8x32xf32>
    %88 = arith.addf %86, %87 : vector<8x32xf32>
    %89 = vector.broadcast %5 : vector<1x32xf32> to vector<8x32xf32>
    %90 = arith.addf %88, %89 : vector<8x32xf32>
    %91 = math.tanh %90 : vector<8x32xf32>
    %c0_49 = arith.constant 0 : index
    %c6 = arith.constant 6 : index
    %c0_50 = arith.constant 0 : index
    %92 = vector.load %arg1[%c0_49, %c6, %c0_50] : memref<8x8x3xf32, #tpu.memory_space<vmem>>, vector<8x1x3xf32>
    %93 = vector.shape_cast %92 : vector<8x1x3xf32> to vector<8x3xf32>
    %cst_51 = arith.constant dense<0.000000e+00> : vector<8x32xf32>
    %94 = tpu.matmul %93, %0, %cst_51 {dimension_numbers = #tpu.dot_dimension_numbers<[1], [0], [0], [1], [0, 0, 1, 1], [], []>} : vector<8x3xf32>, vector<3x32xf32>, vector<8x32xf32> -> vector<8x32xf32>
    %cst_52 = arith.constant dense<0.000000e+00> : vector<8x32xf32>
    %95 = tpu.matmul %85, %1, %cst_52 {dimension_numbers = #tpu.dot_dimension_numbers<[1], [0], [0], [1], [0, 0, 1, 1], [], []>} : vector<8x32xf32>, vector<32x32xf32>, vector<8x32xf32> -> vector<8x32xf32>
    %96 = arith.addf %94, %95 : vector<8x32xf32>
    %97 = vector.broadcast %2 : vector<1x32xf32> to vector<8x32xf32>
    %98 = arith.addf %96, %97 : vector<8x32xf32>
    %99 = math.tanh %98 : vector<8x32xf32>
    %cst_53 = arith.constant dense<0.000000e+00> : vector<8x32xf32>
    %100 = tpu.matmul %99, %3, %cst_53 {dimension_numbers = #tpu.dot_dimension_numbers<[1], [0], [0], [1], [0, 0, 1, 1], [], []>} : vector<8x32xf32>, vector<32x32xf32>, vector<8x32xf32> -> vector<8x32xf32>
    %cst_54 = arith.constant dense<0.000000e+00> : vector<8x32xf32>
    %101 = tpu.matmul %91, %4, %cst_54 {dimension_numbers = #tpu.dot_dimension_numbers<[1], [0], [0], [1], [0, 0, 1, 1], [], []>} : vector<8x32xf32>, vector<32x32xf32>, vector<8x32xf32> -> vector<8x32xf32>
    %102 = arith.addf %100, %101 : vector<8x32xf32>
    %103 = vector.broadcast %5 : vector<1x32xf32> to vector<8x32xf32>
    %104 = arith.addf %102, %103 : vector<8x32xf32>
    %105 = math.tanh %104 : vector<8x32xf32>
    %c0_55 = arith.constant 0 : index
    %c7 = arith.constant 7 : index
    %c0_56 = arith.constant 0 : index
    %106 = vector.load %arg1[%c0_55, %c7, %c0_56] : memref<8x8x3xf32, #tpu.memory_space<vmem>>, vector<8x1x3xf32>
    %107 = vector.shape_cast %106 : vector<8x1x3xf32> to vector<8x3xf32>
    %cst_57 = arith.constant dense<0.000000e+00> : vector<8x32xf32>
    %108 = tpu.matmul %107, %0, %cst_57 {dimension_numbers = #tpu.dot_dimension_numbers<[1], [0], [0], [1], [0, 0, 1, 1], [], []>} : vector<8x3xf32>, vector<3x32xf32>, vector<8x32xf32> -> vector<8x32xf32>
    %cst_58 = arith.constant dense<0.000000e+00> : vector<8x32xf32>
    %109 = tpu.matmul %99, %1, %cst_58 {dimension_numbers = #tpu.dot_dimension_numbers<[1], [0], [0], [1], [0, 0, 1, 1], [], []>} : vector<8x32xf32>, vector<32x32xf32>, vector<8x32xf32> -> vector<8x32xf32>
    %110 = arith.addf %108, %109 : vector<8x32xf32>
    %111 = vector.broadcast %2 : vector<1x32xf32> to vector<8x32xf32>
    %112 = arith.addf %110, %111 : vector<8x32xf32>
    %113 = math.tanh %112 : vector<8x32xf32>
    %cst_59 = arith.constant dense<0.000000e+00> : vector<8x32xf32>
    %114 = tpu.matmul %113, %3, %cst_59 {dimension_numbers = #tpu.dot_dimension_numbers<[1], [0], [0], [1], [0, 0, 1, 1], [], []>} : vector<8x32xf32>, vector<32x32xf32>, vector<8x32xf32> -> vector<8x32xf32>
    %cst_60 = arith.constant dense<0.000000e+00> : vector<8x32xf32>
    %115 = tpu.matmul %105, %4, %cst_60 {dimension_numbers = #tpu.dot_dimension_numbers<[1], [0], [0], [1], [0, 0, 1, 1], [], []>} : vector<8x32xf32>, vector<32x32xf32>, vector<8x32xf32> -> vector<8x32xf32>
    %116 = arith.addf %114, %115 : vector<8x32xf32>
    %117 = vector.broadcast %5 : vector<1x32xf32> to vector<8x32xf32>
    %118 = arith.addf %116, %117 : vector<8x32xf32>
    %119 = math.tanh %118 : vector<8x32xf32>
    %c0_61 = arith.constant 0 : index
    %c0_62 = arith.constant 0 : index
    %120 = vector.load %arg8[%c0_61, %c0_62] : memref<1x32xf32, #tpu.memory_space<vmem>>, vector<1x32xf32>
    "tpu.trace_start"() <{level = 10 : i32, message = "oh,bh->ob"}> : () -> ()
    %cst_63 = arith.constant dense<0.000000e+00> : vector<1x8xf32>
    %121 = tpu.matmul %120, %119, %cst_63 {dimension_numbers = #tpu.dot_dimension_numbers<[1], [1], [0], [0], [0, 0, 1, 0], [], []>} : vector<1x32xf32>, vector<8x32xf32>, vector<1x8xf32> -> vector<1x8xf32>
    "tpu.trace_stop"() : () -> ()
    %c0_64 = arith.constant 0 : index
    %c0_65 = arith.constant 0 : index
    %122 = memref.load %arg9[%c0_64, %c0_65] : memref<1x1xf32, #tpu.memory_space<smem>>
    %123 = vector.broadcast %122 : f32 to vector<1x8xf32>
    %124 = arith.addf %121, %123 : vector<1x8xf32>
    %c0_66 = arith.constant 0 : index
    %c0_67 = arith.constant 0 : index
    %125 = vector.load %arg10[%c0_66, %c0_67] : memref<1x8xf32, #tpu.memory_space<vmem>>, vector<1x8xf32>
    tpu.vector_store %arg10[%c0_66, %c0_67], %124 {strides = array<i32>} : memref<1x8xf32, #tpu.memory_space<vmem>>, vector<1x8xf32>,
    return
  }
  func.func @transform_0(%arg0: i32) -> (i32, i32, i32) {
    %c0_i32 = arith.constant 0 : i32
    %c0_i32_0 = arith.constant 0 : i32
    %c0_i32_1 = arith.constant 0 : i32
    return %arg0, %c0_i32, %c0_i32_0 : i32, i32, i32
  }
  func.func @transform_1(%arg0: i32) -> (i32, i32) {
    %c0_i32 = arith.constant 0 : i32
    %c0_i32_0 = arith.constant 0 : i32
    %c0_i32_1 = arith.constant 0 : i32
    return %c0_i32, %c0_i32_0 : i32, i32
  }
  func.func @transform_2(%arg0: i32) -> (i32, i32) {
    %c0_i32 = arith.constant 0 : i32
    %c0_i32_0 = arith.constant 0 : i32
    %c0_i32_1 = arith.constant 0 : i32
    return %c0_i32, %c0_i32_0 : i32, i32
  }
  func.func @transform_3(%arg0: i32) -> (i32, i32) {
    %c0_i32 = arith.constant 0 : i32
    %c0_i32_0 = arith.constant 0 : i32
    %c0_i32_1 = arith.constant 0 : i32
    return %c0_i32, %c0_i32_0 : i32, i32
  }
  func.func @transform_4(%arg0: i32) -> (i32, i32) {
    %c0_i32 = arith.constant 0 : i32
    %c0_i32_0 = arith.constant 0 : i32
    %c0_i32_1 = arith.constant 0 : i32
    return %c0_i32, %c0_i32_0 : i32, i32
  }
  func.func @transform_5(%arg0: i32) -> (i32, i32) {
    %c0_i32 = arith.constant 0 : i32
    %c0_i32_0 = arith.constant 0 : i32
    %c0_i32_1 = arith.constant 0 : i32
    return %c0_i32, %c0_i32_0 : i32, i32
  }
  func.func @transform_6(%arg0: i32) -> (i32, i32) {
    %c0_i32 = arith.constant 0 : i32
    %c0_i32_0 = arith.constant 0 : i32
    %c0_i32_1 = arith.constant 0 : i32
    return %c0_i32, %c0_i32_0 : i32, i32
  }
  func.func @transform_7(%arg0: i32) -> (i32, i32) {
    %c0_i32 = arith.constant 0 : i32
    %c0_i32_0 = arith.constant 0 : i32
    %c0_i32_1 = arith.constant 0 : i32
    return %c0_i32, %c0_i32_0 : i32, i32
  }
  func.func @transform_8(%arg0: i32) -> (i32, i32) {
    %c0_i32 = arith.constant 0 : i32
    %c0_i32_0 = arith.constant 0 : i32
    %c0_i32_1 = arith.constant 0 : i32
    return %c0_i32, %c0_i32_0 : i32, i32
  }
  func.func @transform_9(%arg0: i32) -> (i32, i32) {
    %c0_i32 = arith.constant 0 : i32
    %c0_i32_0 = arith.constant 0 : i32
    return %c0_i32, %arg0 : i32, i32
  }
}

</mosaic_0001>

<bundles_post_ra>
// kernel: tpu_custom_call.1
= control target key start
LH: loop header
LB: loop body
LE: loop exit
PB: predicated region body
PF: predicated region fallthrough
CT: control target
= control target key end

     0   :  { %15 = vsyncpa [#allocation4], 0  ;;  %s4106_s0 = inlined_call_operand.vmem [shape: f32[8,8,3], index: 0, kind: input, shape index: {}]   ;;  %s4107_s1 = inlined_call_operand.hbm [shape: f32[3,32], index: 1, kind: input, shape index: {}]   ;;  %s4108_s2 = inlined_call_operand.vmem [shape: f32[32,32], index: 2, kind: input, shape index: {}]   ;;  %s4109_s3 = inlined_call_operand.vmem [shape: f32[1,32], index: 3, kind: input, shape index: {}]   ;;  %s4110_s4 = inlined_call_operand.vmem [shape: f32[32,32], index: 4, kind: input, shape index: {}]   ;;  %s4111_s5 = inlined_call_operand.vmem [shape: f32[32,32], index: 5, kind: input, shape index: {}]   ;;  %s4112_s6 = inlined_call_operand.vmem [shape: f32[1,32], index: 6, kind: input, shape index: {}]   ;;  %s4113_s7 = inlined_call_operand.vmem [shape: f32[1,32], index: 7, kind: input, shape index: {}]   ;;  %s4114_s8 = inlined_call_operand.<no memory space> [shape: f32[1,1], index: 8, kind: input, shape index: {}]   ;;  %s4115_s9 = inlined_call_operand.hbm [shape: f32[1,8], index: 9, kind: output, shape index: {}]  }
   0x1   :  { %16 = vsyncpa [#allocation5], 0  ;;  %s3476_s30 = smov [#allocation3]   ;;  %s3428_s13 = scalar_lea.hbm %s4107_s1, 64 }
   0x2   :  { %s25_s10 = sshll.u32 %s3476_s30, 4  ;;  %p3429_p0 = scmp.ne.s32.totalorder %s4107_s1, %s3428_s13  ;;  %s26_s10 = int_to_ptr.vmem [resolvable:$true] %s25_s10 }
   0x3   :  { %p3432_p1 = scmp.lt.u32.totalorder %s3428_s13, %s4107_s1 }
   0x5   :  { %p3434_p2 = pnand %p3432_p1, %p3429_p0 }
   0x7   :  { %3437 = shalt.err (!%p3434_p2)
}
   0x8   :  { %s3438_s18 = scalar_lea.vmem %s26_s10, 64  ;;  %p3443_p4 = scmp.lt.s32.totalorder %s26_s10, %s26_s10 }
   0x9   :  { %p3439_p3 = scmp.ne.s32.totalorder %s26_s10, %s3438_s18  ;;  %p3444_p5 = scmp.lt.s32.totalorder %s3438_s18, %s3438_s18 }
   0xb   :  { %p3445_p6 = por %p3444_p5, %p3443_p4 }
   0xd   :  { %p3446_p7 = pnand %p3445_p6, %p3439_p3 }
   0xf   :  { %3449 = shalt.err (!%p3446_p7)
}
  0x10   :  { %28 = dma.hbm_to_vmem [thread:$0]  %s4107_s1, 64, %s26_s10, [#allocation4]  }
  0x11   :  { %3472 = dma.done.wait [#allocation4], 64  }
  0x12   :  { %3473 = vsyncadd [#allocation4], 4294967232  ;;  %v3477_v0 = vmov 0.0|0.0   ;;  %v3478_v1 = vmov 0.0   ;;  %vm3479_vm0 = vmmov 0   ;;  %vm175_vm1 = vcmask 1042432  }
  0x13   :  { %3247 = vmatprep.subr.bf16.mxu0 %v3477_v0  ;;  %2949 = vmatprep.subr.mxu1 %v3478_v1  ;;  %v47_v2 = vld [vmem:[%s4108_s2] sm:$0xff]  ;;  %v48_v3 = vld [vmem:[%s4108_s2 + $0x8] sm:$0xff]  ;;  %v49_v4 = vld [vmem:[%s4108_s2 + $0x10] sm:$0xff]  ;;  %vm152_vm2 = vcmask 1041409   ;;  %vm155_vm3 = vcmask 1042434   ;;  %vm158_vm4 = vcmask 1043459  }
  0x14   :  { %2946 = vmatprep.mubr.msk.f32.mxu0 %vm3479_vm0, %v3478_v1  ;;  %2951 = vmatprep.mubr.msk.f32.mxu1 %vm3479_vm0, %v3478_v1  ;;  %v3558_v5 = vpack.c.bf16 %v48_v3, %v47_v2  ;;  %v50_v6 = vld [vmem:[%s4108_s2 + $0x18] sm:$0xff]  ;;  %v3563_v7 = vld [vmem:[#allocation3] sm:$0x7]  ;;  %v62_v8 = vld [vmem:[%s4106_s0 + $0x8] sm:$0x1]  ;;  %vm161_vm5 = vcmask 1044484  }
  0x15   :  { %2950 = vmatpush3.msk.msra.mxu1 %vm175_vm1, %v3563_v7  ;;  %v63_v9 = vld [vmem:[%s4106_s0 + $0x10] sm:$0x1]  ;;  %v64_v10 = vld [vmem:[%s4106_s0 + $0x18] sm:$0x1]  ;;  %v3577_v11 = vpack.c.bf16 %v50_v6, %v49_v4  ;;  %v61_v12 = vld [vmem:[%s4106_s0] sm:$0x1] }
  0x16   :  { %3249 = vmatpush3.bf16.msra.mxu0 %v3558_v5  ;;  %v65_v13 = vld [vmem:[%s4106_s0 + $0x20] sm:$0x1]  ;;  %v66_v14 = vld [vmem:[%s4106_s0 + $0x28] sm:$0x1]  ;;  %3253 = vmatprep.subr.bf16.mxu1 %v3477_v0  ;;  %v67_v15 = vld [vmem:[%s4106_s0 + $0x30] sm:$0x1] }
  0x17   :  { %3250 = vmatprep.subr.bf16.mxu0 %v3477_v0  ;;  %v151_v16 = vrot.slane %v62_v8, 7  ;;  %v154_v17 = vrot.slane %v63_v9, 6  ;;  %v157_v18 = vrot.slane %v64_v10, 5  ;;  %v68_v19 = vld [vmem:[%s4106_s0 + $0x38] sm:$0x1]  ;;  %v160_v20 = vrot.slane %v65_v13, 4 }
  0x18   :  { %v163_v22 = vrot.slane %v66_v14, 3  ;;  %vm164_vm6 = vcmask 1045509   ;;  %v166_v24 = vrot.slane %v67_v15, 2  ;;  %vm167_vm7 = vcmask 1046534   ;;  %v56_v31 = vld [vmem:[%s4111_s5] sm:$0xff]  ;;  %v57_v32 = vld [vmem:[%s4111_s5 + $0x8] sm:$0xff] }
  0x19   :  { %v153_v21 = vsel %vm152_vm2, %v151_v16, %v61_v12  ;;  %v169_v26 = vrot.slane %v68_v19, 1  ;;  %vm170_vm8 = vcmask 1047559   ;;  %vm172_vm9 = vcmask 23552   ;;  %v58_v34 = vld [vmem:[%s4111_s5 + $0x10] sm:$0xff]  ;;  %v59_v35 = vld [vmem:[%s4111_s5 + $0x18] sm:$0xff]  ;;  %v52_v37 = vld [vmem:[%s4110_s4] sm:$0xff] }
  0x1a   :  { %3252 = vmatpush3.bf16.msra.mxu0 %v3577_v11  ;;  %v156_v23 = vsel %vm155_vm3, %v154_v17, %v153_v21  ;;  %v3617_v33 = vpack.c.bf16 %v57_v32, %v56_v31  ;;  %v3627_v36 = vpack.c.bf16 %v59_v35, %v58_v34  ;;  %v53_v38 = vld [vmem:[%s4110_s4 + $0x8] sm:$0xff]  ;;  %v54_v39 = vld [vmem:[%s4110_s4 + $0x10] sm:$0xff]  ;;  %v55_v41 = vld [vmem:[%s4110_s4 + $0x18] sm:$0xff]  ;;  %vm69_vm10 = vcmask 261120   ;;  %s3480_s23 = smov [#allocation6]  }
  0x1b   :  { %v159_v25 = vsel %vm158_vm4, %v157_v18, %v156_v23  ;;  %3259 = vmatprep.subr.bf16.mxu0 %v3477_v0  ;;  %v3640_v40 = vpack.c.bf16 %v53_v38, %v52_v37  ;;  %v3647_v42 = vpack.c.bf16 %v55_v41, %v54_v39  ;;  %v409_v43 = vld [vmem:[%s4106_s0 + $0x9] sm:$0x1]  ;;  %v410_v44 = vld [vmem:[%s4106_s0 + $0x11] sm:$0x1]  ;;  %v408_v46 = vld [vmem:[%s4106_s0 + $0x1] sm:$0x1] }
  0x1c   :  { %v162_v27 = vsel %vm161_vm5, %v160_v20, %v159_v25  ;;  %v494_v45 = vrot.slane %v409_v43, 7  ;;  %v411_v49 = vld [vmem:[%s4106_s0 + $0x19] sm:$0x1]  ;;  %v496_v50 = vrot.slane %v410_v44, 6  ;;  %v3674_v52 = vld [vmem:[%s4109_s3] ss:$0 sm:$0xff] }
  0x1d   :  { %2947 = vmatmul.mubr.f32.vlgmr.msra.gmra.mrb[0].mxu0 %v3478_v1  ;;  %v165_v28 = vsel %vm164_vm6, %v163_v22, %v162_v27  ;;  %v412_v56 = vld [vmem:[%s4106_s0 + $0x21] sm:$0x1]  ;;  %v498_v57 = vrot.slane %v411_v49, 5  ;;  %v413_v60 = vld [vmem:[%s4106_s0 + $0x29] sm:$0x1]  ;;  %s2749_s24 = sshll.u32 %s3480_s23, 4  ;;  %s2750_s24 = int_to_ptr.vmem [resolvable:$true] %s2749_s24 }
  0x1e   :  { %v168_v29 = vsel %vm167_vm7, %v166_v24, %v165_v28  ;;  %2973 = vmatprep.mubr.msk.f32.mxu0 %vm3479_vm0, %v3478_v1  ;;  %3261 = vmatpush3.bf16.msra.mxu0 %v3640_v40  ;;  %v495_v51 = vsel %vm152_vm2, %v494_v45, %v408_v46  ;;  %v500_v61 = vrot.slane %v412_v56, 4  ;;  %v414_v63 = vld [vmem:[%s4106_s0 + $0x31] sm:$0x1]  ;;  %v502_v2 = vrot.slane %v413_v60, 3  ;;  %v415_v4 = vld [vmem:[%s4106_s0 + $0x39] sm:$0x1]  ;;  %p3455_p9 = scmp.lt.s32.totalorder %s2750_s24, %s2750_s24 }
  0x1f   :  { %v171_v30 = vsel %vm170_vm8, %v169_v26, %v168_v29  ;;  %3262 = vmatprep.subr.bf16.mxu0 %v3477_v0  ;;  %v497_v58 = vsel %vm155_vm3, %v496_v50, %v495_v51  ;;  %v504_v6 = vrot.slane %v414_v63, 2  ;;  %v506_v9 = vrot.slane %v415_v4, 1  ;;  %v731_v16 = vld [vmem:[%s4106_s0 + $0xa] sm:$0x1]  ;;  %v732_v17 = vld [vmem:[%s4106_s0 + $0x12] sm:$0x1] }
  0x20   :  { %2952 = vmatmul.mubr.msk.f32.vlgmr.msra.gmra.mrb[0].mxu1 %vm172_vm9, %v171_v30  ;;  %v499_v62 = vsel %vm158_vm4, %v498_v57, %v497_v58  ;;  %v816_v18 = vrot.slane %v731_v16, 7  ;;  %v3724_v19 = vld [vmem:[%s4112_s6] ss:$0 sm:$0xff]  ;;  %v730_v22 = vld [vmem:[%s4106_s0 + $0x2] sm:$0x1]  ;;  %v818_v27 = vrot.slane %v732_v17, 6 }
  0x21   :  { %2962 = vmatprep.mubr.msk.f32.mxu1 %vm3479_vm0, %v3478_v1  ;;  %3255 = vmatpush3.bf16.msra.mxu1 %v3617_v33  ;;  %v501_v3 = vsel %vm161_vm5, %v500_v61, %v499_v62  ;;  %v733_v26 = vld [vmem:[%s4106_s0 + $0x1a] sm:$0x1]  ;;  %v734_v34 = vld [vmem:[%s4106_s0 + $0x22] sm:$0x1]  ;;  %v735_v39 = vld [vmem:[%s4106_s0 + $0x2a] sm:$0x1] }
  0x22   :  { %3256 = vmatprep.subr.bf16.mxu1 %v3477_v0  ;;  %3264 = vmatpush3.bf16.msra.mxu0 %v3647_v42  ;;  %v503_v8 = vsel %vm164_vm6, %v502_v2, %v501_v3  ;;  %v817_v29 = vsel %vm152_vm2, %v816_v18, %v730_v22  ;;  %v820_v35 = vrot.slane %v733_v26, 5  ;;  %v822_v41 = vrot.slane %v734_v34, 4  ;;  %v736_v44 = vld [vmem:[%s4106_s0 + $0x32] sm:$0x1]  ;;  %v1053_v57 = vld [vmem:[%s4106_s0 + $0xb] sm:$0x1] }
  0x23   :  { %2987 = vmatprep.subr.mxu0 %v3478_v1  ;;  %v505_v10 = vsel %vm167_vm7, %v504_v6, %v503_v8  ;;  %v819_v37 = vsel %vm155_vm3, %v818_v27, %v817_v29  ;;  %v824_v45 = vrot.slane %v735_v39, 3  ;;  %v1138_v60 = vrot.slane %v1053_v57, 7  ;;  %v1052_v62 = vld [vmem:[%s4106_s0 + $0x3] sm:$0x1]  ;;  %v1055_v3 = vld [vmem:[%s4106_s0 + $0x1b] sm:$0x1] }
  0x24   :  { %v507_v13 = vsel %vm170_vm8, %v506_v9, %v505_v10  ;;  %v821_v43 = vsel %vm158_vm4, %v820_v35, %v819_v37  ;;  %v1142_v16 = vrot.slane %v1055_v3, 5  ;;  %v1059_v26 = vld [vmem:[%s4106_s0 + $0x3b] sm:$0x1]  ;;  %v1375_v37 = vld [vmem:[%s4106_s0 + $0xc] sm:$0x1]  ;;  %vm2741_vm11 = vcmask 57344  }
  0x25   :  { %3258 = vmatpush3.bf16.msra.mxu1 %v3627_v36  ;;  %v823_v46 = vsel %vm161_vm5, %v822_v41, %v821_v43  ;;  %v1139_v8 = vsel %vm152_vm2, %v1138_v60, %v1052_v62  ;;  %v1376_v39 = vld [vmem:[%s4106_s0 + $0x14] sm:$0x1]  ;;  %v1460_v41 = vrot.slane %v1375_v37, 7  ;;  %v1378_v57 = vld [vmem:[%s4106_s0 + $0x24] sm:$0x1]  ;;  %s3450_s25 = scalar_lea.vmem %s2750_s24, 16 }
  0x26   :  { %3265 = vmatprep.subr.bf16.mxu1 %v3477_v0  ;;  %v825_v50 = vsel %vm164_vm6, %v824_v45, %v823_v46  ;;  %v1466_v62 = vrot.slane %v1378_v57, 4  ;;  %v1700_v37 = vld [vmem:[%s4106_s0 + $0x25] sm:$0x1]  ;;  %p3451_p8 = scmp.ne.s32.totalorder %s2750_s24, %s3450_s25  ;;  %s3454_s3 = scalar_lea.vmem %s2750_s24, 32 }
  0x27   :  { %p3456_p10 = scmp.lt.s32.totalorder %s3454_s3, %s3450_s25 }
  0x28   :  { %2963 = vmatmul.mubr.f32.vlgmr.msra.gmra.mrb[2].mxu1 %v3478_v1 }
  0x29   :  { %3267 = vmatpush3.bf16.msra.mxu1 %v3558_v5  ;;  %2984 = vmatprep.mubr.msk.f32.mxu1 %vm3479_vm0, %v3478_v1  ;;  %p3457_p11 = por %p3456_p10, %p3455_p9 }
  0x2a   :  { %3268 = vmatprep.subr.bf16.mxu1 %v3477_v0 }
  0x2b   :  { %p3458_p12 = pnand %p3457_p11, %p3451_p8 }
  0x2d   :  { %3270 = vmatpush3.bf16.msra.mxu1 %v3577_v11 }
  0x2e   :  { %3271 = vmatprep.subr.bf16.mxu1 %v3477_v0 }
  0xf0   :  { %v139_v47 = vpop.f32.mrb[0].mxu0 }
  0xf1   :  { %v2948_v48 = vpop.f32.mrb[1].mxu0 }
  0xf2   :  { %v826_v48 = vrot.slane %v736_v44, 2  ;;  %v1374_v44 = vld [vmem:[%s4106_s0 + $0x4] sm:$0x1] }
  0xf3   :  { %v245_v53 = vpop.f32.mrb[0].mxu1 }
  0xf4   :  { %v246_v54 = vadd.f32 %v245_v53, %v139_v47  ;;  %v2953_v55 = vpop.f32.mrb[1].mxu1  ;;  %v737_v47 = vld [vmem:[%s4106_s0 + $0x3a] sm:$0x1]  ;;  %v827_v53 = vsel %vm167_vm7, %v826_v48, %v825_v50  ;;  %v1462_v48 = vrot.slane %v1376_v39, 6  ;;  %v1461_v50 = vsel %vm152_vm2, %v1460_v41, %v1374_v44 }
  0xf5   :  { %v828_v51 = vrot.slane %v737_v47, 1  ;;  %v1377_v47 = vld [vmem:[%s4106_s0 + $0x1c] sm:$0x1]  ;;  %v1788_v44 = vrot.slane %v1700_v37, 4 }
  0xf6   :  { %v255_v59 = vadd.f32 %v3674_v52, %v246_v54 }
  0xf7   :  { %v829_v55 = vsel %vm170_vm8, %v828_v51, %v827_v53 }
  0xf8   :  { %3396 = vtanh.f32 %v255_v59  ;;  %v1054_v59 = vld [vmem:[%s4106_s0 + $0x13] sm:$0x1] }
  0xf9   :  { %v1140_v4 = vrot.slane %v1054_v59, 6  ;;  %v1463_v59 = vsel %vm155_vm3, %v1462_v48, %v1461_v50 }
  0xfb   :  { %v323_v14 = vpop.f32.mrb[2].mxu1  ;;  %v1141_v17 = vsel %vm155_vm3, %v1140_v4, %v1139_v8 }
  0xfc   :  { %v2964_v15 = vpop.f32.mrb[3].mxu1  ;;  %v1143_v22 = vsel %vm158_vm4, %v1142_v16, %v1141_v17  ;;  %v1697_v17 = vld [vmem:[%s4106_s0 + $0xd] sm:$0x1] }
  0xfd   :  { %v1056_v15 = vld [vmem:[%s4106_s0 + $0x23] sm:$0x1] }
 0x102   :  { %v3397_v12 = vpop.eup %3396 }
 0x103   :  { %2974 = vmatmul.mubr.msk.f32.vlgmr.msra.gmra.mrb[2].mxu0 %vm69_vm10, %v3397_v12  ;;  %2985 = vmatmul.mubr.msk.f32.vlgmr.msra.gmra.mrb[4].mxu1 %vm69_vm10, %v3397_v12 }
 0x104   :  { %2988 = vmatpush3.msk.msra.mxu0 %vm175_vm1, %v3563_v7  ;;  %2989 = vmatprep.mubr.msk.f32.mxu0 %vm3479_vm0, %v3478_v1 }
 0x105   :  { %3273 = vmatpush3.bf16.msra.mxu1 %v3617_v33  ;;  %3277 = vmatprep.subr.bf16.mxu0 %v3477_v0 }
 0x106   :  { %3274 = vmatprep.subr.bf16.mxu1 %v3477_v0  ;;  %3000 = vmatprep.mubr.msk.f32.mxu1 %vm3479_vm0, %v3478_v1 }
 0x107   :  { %2990 = vmatmul.mubr.msk.f32.vlgmr.msra.gmra.mrb[4].mxu0 %vm172_vm9, %v507_v13 }
 0x108   :  { %3279 = vmatpush3.bf16.msra.mxu0 %v3640_v40  ;;  %3011 = vmatprep.mubr.msk.f32.mxu0 %vm3479_vm0, %v3478_v1 }
 0x109   :  { %3276 = vmatpush3.bf16.msra.mxu1 %v3627_v36  ;;  %3280 = vmatprep.subr.bf16.mxu0 %v3477_v0 }
 0x10a   :  { %3283 = vmatprep.subr.bf16.mxu1 %v3477_v0 }
 0x10c   :  { %3282 = vmatpush3.bf16.msra.mxu0 %v3647_v42 }
 0x10d   :  { %3025 = vmatprep.subr.mxu0 %v3478_v1 }
 0x1d6   :  { %v396_v20 = vpop.f32.mrb[2].mxu0  ;;  %v482_v21 = vpop.f32.mrb[4].mxu1 }
 0x1d7   :  { %v397_v23 = vadd.f32 %v396_v20, %v323_v14  ;;  %v2975_v24 = vpop.f32.mrb[3].mxu0  ;;  %v2986_v25 = vpop.f32.mrb[5].mxu1  ;;  %v1057_v20 = vld [vmem:[%s4106_s0 + $0x2b] sm:$0x1] }
 0x1d8   :  { %v1146_v24 = vrot.slane %v1057_v20, 3  ;;  %v1698_v20 = vld [vmem:[%s4106_s0 + $0x15] sm:$0x1] }
 0x1d9   :  { %v406_v28 = vadd.f32 %v3724_v19, %v397_v23  ;;  %v1058_v23 = vld [vmem:[%s4106_s0 + $0x33] sm:$0x1] }
 0x1da   :  { %v576_v30 = vpop.f32.mrb[4].mxu0  ;;  %v1148_v27 = vrot.slane %v1058_v23, 2  ;;  %v1696_v23 = vld [vmem:[%s4106_s0 + $0x5] sm:$0x1] }
 0x1db   :  { %3398 = vtanh.f32 %v406_v28  ;;  %v577_v31 = vadd.f32 %v576_v30, %v482_v21  ;;  %v2991_v32 = vpop.f32.mrb[5].mxu0  ;;  %v1144_v21 = vrot.slane %v1056_v15, 4  ;;  %v1150_v30 = vrot.slane %v1059_v26, 1  ;;  %v1699_v26 = vld [vmem:[%s4106_s0 + $0x1d] sm:$0x1] }
 0x1dd   :  { %v580_v38 = vadd.f32 %v3674_v52, %v577_v31  ;;  %v1145_v25 = vsel %vm161_vm5, %v1144_v21, %v1143_v22  ;;  %v1782_v21 = vrot.slane %v1697_v17, 7  ;;  %v2022_v17 = vld [vmem:[%s4106_s0 + $0x26] sm:$0x1] }
 0x1de   :  { %v1147_v29 = vsel %vm164_vm6, %v1146_v24, %v1145_v25 }
 0x1df   :  { %3400 = vtanh.f32 %v580_v38  ;;  %v1149_v31 = vsel %vm167_vm7, %v1148_v27, %v1147_v29  ;;  %v1784_v27 = vrot.slane %v1698_v20, 6  ;;  %v1783_v29 = vsel %vm152_vm2, %v1782_v21, %v1696_v23 }
 0x1e0   :  { %v1151_v34 = vsel %vm170_vm8, %v1150_v30, %v1149_v31  ;;  %v2110_v23 = vrot.slane %v2022_v17, 4 }
 0x1e1   :  { %v1785_v39 = vsel %vm155_vm3, %v1784_v27, %v1783_v29 }
 0x1e5   :  { %v3399_v49 = vpop.eup %3398 }
 0x1e6   :  { %3001 = vmatmul.mubr.msk.f32.vlgmr.msra.gmra.mrb[6].mxu1 %vm69_vm10, %v3399_v49 }
 0x1e7   :  { %3285 = vmatpush3.bf16.msra.mxu1 %v3558_v5  ;;  %3022 = vmatprep.mubr.msk.f32.mxu1 %vm3479_vm0, %v3478_v1 }
 0x1e8   :  { %3286 = vmatprep.subr.bf16.mxu1 %v3477_v0 }
 0x1e9   :  { %v3401_v54 = vpop.eup %3400 }
 0x1ea   :  { %3012 = vmatmul.mubr.msk.f32.vlgmr.msra.gmra.mrb[6].mxu0 %vm69_vm10, %v3401_v54 }
 0x1eb   :  { %3288 = vmatpush3.bf16.msra.mxu1 %v3577_v11  ;;  %3026 = vmatpush3.msk.msra.mxu0 %vm175_vm1, %v3563_v7 }
 0x1ec   :  { %3027 = vmatprep.mubr.msk.f32.mxu0 %vm3479_vm0, %v3478_v1  ;;  %3289 = vmatprep.subr.bf16.mxu0 %v3477_v0 }
 0x1ed   :  { %3295 = vmatprep.subr.bf16.mxu1 %v3477_v0 }
 0x1ee   :  { %3023 = vmatmul.mubr.msk.f32.vlgmr.msra.gmra.mrb[8].mxu1 %vm69_vm10, %v3401_v54  ;;  %3028 = vmatmul.mubr.msk.f32.vlgmr.msra.gmra.mrb[8].mxu0 %vm172_vm9, %v829_v55 }
 0x1ef   :  { %3291 = vmatpush3.bf16.msra.mxu0 %v3617_v33  ;;  %3297 = vmatpush3.bf16.msra.mxu1 %v3640_v40 }
 0x1f0   :  { %3292 = vmatprep.subr.bf16.mxu0 %v3477_v0  ;;  %3038 = vmatprep.mubr.msk.f32.mxu0 %vm3479_vm0, %v3478_v1 }
 0x1f1   :  { %3298 = vmatprep.subr.bf16.mxu1 %v3477_v0  ;;  %3049 = vmatprep.mubr.msk.f32.mxu1 %vm3479_vm0, %v3478_v1 }
 0x1f3   :  { %3294 = vmatpush3.bf16.msra.mxu0 %v3627_v36  ;;  %3300 = vmatpush3.bf16.msra.mxu1 %v3647_v42 }
 0x1f4   :  { %3301 = vmatprep.subr.bf16.mxu0 %v3477_v0  ;;  %3063 = vmatprep.subr.mxu1 %v3478_v1 }
 0x2b9   :  { %v651_v56 = vpop.f32.mrb[6].mxu1 }
 0x2ba   :  { %v3002_v58 = vpop.f32.mrb[7].mxu1 }
 0x2bb   :  { %v1464_v58 = vrot.slane %v1377_v47, 5 }
 0x2bd   :  { %v724_v61 = vpop.f32.mrb[6].mxu0 }
 0x2be   :  { %v725_v63 = vadd.f32 %v724_v61, %v651_v56  ;;  %v3013_v2 = vpop.f32.mrb[7].mxu0  ;;  %v1379_v61 = vld [vmem:[%s4106_s0 + $0x2c] sm:$0x1] }
 0x2bf   :  { %v1380_v2 = vld [vmem:[%s4106_s0 + $0x34] sm:$0x1]  ;;  %v1468_v3 = vrot.slane %v1379_v61, 3  ;;  %v2020_v61 = vld [vmem:[%s4106_s0 + $0x16] sm:$0x1] }
 0x2c0   :  { %v728_v6 = vadd.f32 %v3724_v19, %v725_v63  ;;  %v1465_v63 = vsel %vm158_vm4, %v1464_v58, %v1463_v59  ;;  %v1470_v8 = vrot.slane %v1380_v2, 2  ;;  %v2019_v59 = vld [vmem:[%s4106_s0 + $0xe] sm:$0x1]  ;;  %v2018_v2 = vld [vmem:[%s4106_s0 + $0x6] sm:$0x1] }
 0x2c1   :  { %v804_v9 = vpop.f32.mrb[8].mxu1  ;;  %v898_v10 = vpop.f32.mrb[8].mxu0  ;;  %v1467_v4 = vsel %vm161_vm5, %v1466_v62, %v1465_v63  ;;  %v2104_v62 = vrot.slane %v2019_v59, 7  ;;  %v2344_v59 = vld [vmem:[%s4106_s0 + $0x27] sm:$0x1] }
 0x2c2   :  { %3402 = vtanh.f32 %v728_v6  ;;  %v3024_v12 = vpop.f32.mrb[9].mxu1  ;;  %v899_v13 = vadd.f32 %v898_v10, %v804_v9  ;;  %v3029_v14 = vpop.f32.mrb[9].mxu0  ;;  %v1381_v6 = vld [vmem:[%s4106_s0 + $0x3c] sm:$0x1]  ;;  %v1469_v10 = vsel %vm164_vm6, %v1468_v3, %v1467_v4 }
 0x2c3   :  { %v1472_v12 = vrot.slane %v1381_v6, 1  ;;  %v2021_v6 = vld [vmem:[%s4106_s0 + $0x1e] sm:$0x1] }
 0x2c4   :  { %v902_v18 = vadd.f32 %v3674_v52, %v899_v13  ;;  %v1471_v13 = vsel %vm167_vm7, %v1470_v8, %v1469_v10  ;;  %v2106_v8 = vrot.slane %v2020_v61, 6  ;;  %v2105_v10 = vsel %vm152_vm2, %v2104_v62, %v2018_v2 }
 0x2c5   :  { %v1473_v15 = vsel %vm170_vm8, %v1472_v12, %v1471_v13  ;;  %v2432_v2 = vrot.slane %v2344_v59, 4 }
 0x2c6   :  { %3404 = vtanh.f32 %v902_v18  ;;  %v2107_v20 = vsel %vm155_vm3, %v2106_v8, %v2105_v10 }
 0x2cc   :  { %v3403_v28 = vpop.eup %3402 }
 0x2cd   :  { %3039 = vmatmul.mubr.msk.f32.vlgmr.msra.gmra.mrb[10].mxu0 %vm69_vm10, %v3403_v28 }
 0x2ce   :  { %3303 = vmatpush3.bf16.msra.mxu0 %v3558_v5  ;;  %3060 = vmatprep.mubr.msk.f32.mxu0 %vm3479_vm0, %v3478_v1 }
 0x2cf   :  { %3304 = vmatprep.subr.bf16.mxu0 %v3477_v0 }
 0x2d0   :  { %v3405_v32 = vpop.eup %3404 }
 0x2d1   :  { %3050 = vmatmul.mubr.msk.f32.vlgmr.msra.gmra.mrb[10].mxu1 %vm69_vm10, %v3405_v32 }
 0x2d2   :  { %3306 = vmatpush3.bf16.msra.mxu0 %v3577_v11  ;;  %3064 = vmatpush3.msk.msra.mxu1 %vm175_vm1, %v3563_v7 }
 0x2d3   :  { %3065 = vmatprep.mubr.msk.f32.mxu1 %vm3479_vm0, %v3478_v1  ;;  %3307 = vmatprep.subr.bf16.mxu1 %v3477_v0 }
 0x2d4   :  { %3313 = vmatprep.subr.bf16.mxu0 %v3477_v0 }
 0x2d5   :  { %3061 = vmatmul.mubr.msk.f32.vlgmr.msra.gmra.mrb[12].mxu0 %vm69_vm10, %v3405_v32  ;;  %3066 = vmatmul.mubr.msk.f32.vlgmr.msra.gmra.mrb[12].mxu1 %vm172_vm9, %v1151_v34 }
 0x2d6   :  { %3309 = vmatpush3.bf16.msra.mxu1 %v3617_v33  ;;  %3315 = vmatpush3.bf16.msra.mxu0 %v3640_v40 }
 0x2d7   :  { %3310 = vmatprep.subr.bf16.mxu1 %v3477_v0  ;;  %3076 = vmatprep.mubr.msk.f32.mxu1 %vm3479_vm0, %v3478_v1 }
 0x2d8   :  { %3316 = vmatprep.subr.bf16.mxu0 %v3477_v0  ;;  %3087 = vmatprep.mubr.msk.f32.mxu0 %vm3479_vm0, %v3478_v1 }
 0x2da   :  { %3312 = vmatpush3.bf16.msra.mxu1 %v3627_v36  ;;  %3318 = vmatpush3.bf16.msra.mxu0 %v3647_v42 }
 0x2db   :  { %3319 = vmatprep.subr.bf16.mxu1 %v3477_v0  ;;  %3101 = vmatprep.subr.mxu0 %v3478_v1 }
 0x3a0   :  { %v973_v35 = vpop.f32.mrb[10].mxu0 }
 0x3a1   :  { %v3040_v38 = vpop.f32.mrb[11].mxu0 }
 0x3a2   :  { %v1786_v38 = vrot.slane %v1699_v26, 5 }
 0x3a4   :  { %v1046_v43 = vpop.f32.mrb[10].mxu1 }
 0x3a5   :  { %v1047_v45 = vadd.f32 %v1046_v43, %v973_v35  ;;  %v3051_v46 = vpop.f32.mrb[11].mxu1  ;;  %v1701_v43 = vld [vmem:[%s4106_s0 + $0x2d] sm:$0x1] }
 0x3a6   :  { %v1702_v46 = vld [vmem:[%s4106_s0 + $0x35] sm:$0x1]  ;;  %v1790_v47 = vrot.slane %v1701_v43, 3  ;;  %v2342_v43 = vld [vmem:[%s4106_s0 + $0x17] sm:$0x1] }
 0x3a7   :  { %v1050_v49 = vadd.f32 %v3724_v19, %v1047_v45  ;;  %v1787_v45 = vsel %vm158_vm4, %v1786_v38, %v1785_v39  ;;  %v1792_v50 = vrot.slane %v1702_v46, 2  ;;  %v2341_v39 = vld [vmem:[%s4106_s0 + $0xf] sm:$0x1]  ;;  %v2340_v46 = vld [vmem:[%s4106_s0 + $0x7] sm:$0x1] }
 0x3a8   :  { %v1126_v51 = vpop.f32.mrb[12].mxu0  ;;  %v1220_v53 = vpop.f32.mrb[12].mxu1  ;;  %v1789_v48 = vsel %vm161_vm5, %v1788_v44, %v1787_v45  ;;  %v2426_v44 = vrot.slane %v2341_v39, 7 }
 0x3a9   :  { %3406 = vtanh.f32 %v1050_v49  ;;  %v3062_v54 = vpop.f32.mrb[13].mxu0  ;;  %v1221_v55 = vadd.f32 %v1220_v53, %v1126_v51  ;;  %v3067_v56 = vpop.f32.mrb[13].mxu1  ;;  %v1703_v49 = vld [vmem:[%s4106_s0 + $0x3d] sm:$0x1]  ;;  %v1791_v53 = vsel %vm164_vm6, %v1790_v47, %v1789_v48 }
 0x3aa   :  { %v1794_v54 = vrot.slane %v1703_v49, 1  ;;  %v2343_v49 = vld [vmem:[%s4106_s0 + $0x1f] sm:$0x1] }
 0x3ab   :  { %v1224_v60 = vadd.f32 %v3674_v52, %v1221_v55  ;;  %v1793_v55 = vsel %vm167_vm7, %v1792_v50, %v1791_v53  ;;  %v2428_v50 = vrot.slane %v2342_v43, 6  ;;  %v2427_v53 = vsel %vm152_vm2, %v2426_v44, %v2340_v46 }
 0x3ac   :  { %v1795_v57 = vsel %vm170_vm8, %v1794_v54, %v1793_v55 }
 0x3ad   :  { %3408 = vtanh.f32 %v1224_v60  ;;  %v2429_v61 = vsel %vm155_vm3, %v2428_v50, %v2427_v53 }
 0x3b3   :  { %v3407_v9 = vpop.eup %3406 }
 0x3b4   :  { %3077 = vmatmul.mubr.msk.f32.vlgmr.msra.gmra.mrb[14].mxu1 %vm69_vm10, %v3407_v9 }
 0x3b5   :  { %3321 = vmatpush3.bf16.msra.mxu1 %v3558_v5  ;;  %3098 = vmatprep.mubr.msk.f32.mxu1 %vm3479_vm0, %v3478_v1 }
 0x3b6   :  { %3322 = vmatprep.subr.bf16.mxu1 %v3477_v0 }
 0x3b7   :  { %v3409_v14 = vpop.eup %3408 }
 0x3b8   :  { %3088 = vmatmul.mubr.msk.f32.vlgmr.msra.gmra.mrb[14].mxu0 %vm69_vm10, %v3409_v14 }
 0x3b9   :  { %3324 = vmatpush3.bf16.msra.mxu1 %v3577_v11  ;;  %3102 = vmatpush3.msk.msra.mxu0 %vm175_vm1, %v3563_v7 }
 0x3ba   :  { %3103 = vmatprep.mubr.msk.f32.mxu0 %vm3479_vm0, %v3478_v1  ;;  %3325 = vmatprep.subr.bf16.mxu0 %v3477_v0 }
 0x3bb   :  { %3331 = vmatprep.subr.bf16.mxu1 %v3477_v0 }
 0x3bc   :  { %3099 = vmatmul.mubr.msk.f32.vlgmr.msra.gmra.mrb[16].mxu1 %vm69_vm10, %v3409_v14  ;;  %3104 = vmatmul.mubr.msk.f32.vlgmr.msra.gmra.mrb[16].mxu0 %vm172_vm9, %v1473_v15 }
 0x3bd   :  { %3327 = vmatpush3.bf16.msra.mxu0 %v3617_v33  ;;  %3333 = vmatpush3.bf16.msra.mxu1 %v3640_v40 }
 0x3be   :  { %3328 = vmatprep.subr.bf16.mxu0 %v3477_v0  ;;  %3114 = vmatprep.mubr.msk.f32.mxu0 %vm3479_vm0, %v3478_v1 }
 0x3bf   :  { %3334 = vmatprep.subr.bf16.mxu1 %v3477_v0  ;;  %3125 = vmatprep.mubr.msk.f32.mxu1 %vm3479_vm0, %v3478_v1 }
 0x3c1   :  { %3330 = vmatpush3.bf16.msra.mxu0 %v3627_v36  ;;  %3336 = vmatpush3.bf16.msra.mxu1 %v3647_v42 }
 0x3c2   :  { %3337 = vmatprep.subr.bf16.mxu0 %v3477_v0  ;;  %3139 = vmatprep.subr.mxu1 %v3478_v1 }
 0x487   :  { %v1295_v16 = vpop.f32.mrb[14].mxu1 }
 0x488   :  { %v3078_v18 = vpop.f32.mrb[15].mxu1 }
 0x489   :  { %v2108_v18 = vrot.slane %v2021_v6, 5 }
 0x48b   :  { %v1368_v22 = vpop.f32.mrb[14].mxu0 }
 0x48c   :  { %v1369_v24 = vadd.f32 %v1368_v22, %v1295_v16  ;;  %v3089_v25 = vpop.f32.mrb[15].mxu0  ;;  %v2023_v22 = vld [vmem:[%s4106_s0 + $0x2e] sm:$0x1] }
 0x48d   :  { %v2024_v25 = vld [vmem:[%s4106_s0 + $0x36] sm:$0x1]  ;;  %v2112_v26 = vrot.slane %v2023_v22, 3 }
 0x48e   :  { %v1372_v28 = vadd.f32 %v3724_v19, %v1369_v24  ;;  %v2109_v24 = vsel %vm158_vm4, %v2108_v18, %v2107_v20  ;;  %v2114_v29 = vrot.slane %v2024_v25, 2 }
 0x48f   :  { %v1448_v30 = vpop.f32.mrb[16].mxu1  ;;  %v1542_v31 = vpop.f32.mrb[16].mxu0  ;;  %v2111_v27 = vsel %vm161_vm5, %v2110_v23, %v2109_v24 }
 0x490   :  { %3410 = vtanh.f32 %v1372_v28  ;;  %v3100_v32 = vpop.f32.mrb[17].mxu1  ;;  %v1543_v34 = vadd.f32 %v1542_v31, %v1448_v30  ;;  %v3105_v35 = vpop.f32.mrb[17].mxu0  ;;  %v2025_v28 = vld [vmem:[%s4106_s0 + $0x3e] sm:$0x1]  ;;  %v2113_v31 = vsel %vm164_vm6, %v2112_v26, %v2111_v27 }
 0x491   :  { %v2116_v32 = vrot.slane %v2025_v28, 1 }
 0x492   :  { %v1546_v41 = vadd.f32 %v3674_v52, %v1543_v34  ;;  %v2115_v34 = vsel %vm167_vm7, %v2114_v29, %v2113_v31 }
 0x493   :  { %v2117_v37 = vsel %vm170_vm8, %v2116_v32, %v2115_v34 }
 0x494   :  { %3412 = vtanh.f32 %v1546_v41 }
 0x49a   :  { %v3411_v51 = vpop.eup %3410 }
 0x49b   :  { %3115 = vmatmul.mubr.msk.f32.vlgmr.msra.gmra.mrb[18].mxu0 %vm69_vm10, %v3411_v51 }
 0x49c   :  { %3339 = vmatpush3.bf16.msra.mxu0 %v3558_v5  ;;  %3136 = vmatprep.mubr.msk.f32.mxu0 %vm3479_vm0, %v3478_v1 }
 0x49d   :  { %3340 = vmatprep.subr.bf16.mxu0 %v3477_v0 }
 0x49e   :  { %v3413_v56 = vpop.eup %3412 }
 0x49f   :  { %3126 = vmatmul.mubr.msk.f32.vlgmr.msra.gmra.mrb[18].mxu1 %vm69_vm10, %v3413_v56 }
 0x4a0   :  { %3342 = vmatpush3.bf16.msra.mxu0 %v3577_v11  ;;  %3140 = vmatpush3.msk.msra.mxu1 %vm175_vm1, %v3563_v7 }
 0x4a1   :  { %3141 = vmatprep.mubr.msk.f32.mxu1 %vm3479_vm0, %v3478_v1  ;;  %3343 = vmatprep.subr.bf16.mxu1 %v3477_v0 }
 0x4a2   :  { %3349 = vmatprep.subr.bf16.mxu0 %v3477_v0 }
 0x4a3   :  { %3137 = vmatmul.mubr.msk.f32.vlgmr.msra.gmra.mrb[20].mxu0 %vm69_vm10, %v3413_v56  ;;  %3142 = vmatmul.mubr.msk.f32.vlgmr.msra.gmra.mrb[20].mxu1 %vm172_vm9, %v1795_v57 }
 0x4a4   :  { %3345 = vmatpush3.bf16.msra.mxu1 %v3617_v33  ;;  %3351 = vmatpush3.bf16.msra.mxu0 %v3640_v40 }
 0x4a5   :  { %3346 = vmatprep.subr.bf16.mxu1 %v3477_v0  ;;  %3152 = vmatprep.mubr.msk.f32.mxu1 %vm3479_vm0, %v3478_v1 }
 0x4a6   :  { %3352 = vmatprep.subr.bf16.mxu0 %v3477_v0  ;;  %3163 = vmatprep.mubr.msk.f32.mxu0 %vm3479_vm0, %v3478_v1 }
 0x4a8   :  { %3348 = vmatpush3.bf16.msra.mxu1 %v3627_v36  ;;  %3354 = vmatpush3.bf16.msra.mxu0 %v3647_v42 }
 0x4a9   :  { %3355 = vmatprep.subr.bf16.mxu1 %v3477_v0  ;;  %3177 = vmatprep.subr.mxu0 %v3478_v1 }
 0x56e   :  { %v1617_v58 = vpop.f32.mrb[18].mxu0 }
 0x56f   :  { %v3116_v60 = vpop.f32.mrb[19].mxu0 }
 0x570   :  { %v2430_v60 = vrot.slane %v2343_v49, 5 }
 0x572   :  { %v1690_v63 = vpop.f32.mrb[18].mxu1 }
 0x573   :  { %v1691_v3 = vadd.f32 %v1690_v63, %v1617_v58  ;;  %v3127_v4 = vpop.f32.mrb[19].mxu1  ;;  %v2345_v63 = vld [vmem:[%s4106_s0 + $0x2f] sm:$0x1] }
 0x574   :  { %v2346_v4 = vld [vmem:[%s4106_s0 + $0x37] sm:$0x1]  ;;  %v2434_v6 = vrot.slane %v2345_v63, 3 }
 0x575   :  { %v1694_v9 = vadd.f32 %v3724_v19, %v1691_v3  ;;  %v2431_v3 = vsel %vm158_vm4, %v2430_v60, %v2429_v61  ;;  %v2436_v10 = vrot.slane %v2346_v4, 2 }
 0x576   :  { %v1770_v12 = vpop.f32.mrb[20].mxu0  ;;  %v1864_v13 = vpop.f32.mrb[20].mxu1  ;;  %v2433_v8 = vsel %vm161_vm5, %v2432_v2, %v2431_v3 }
 0x577   :  { %3414 = vtanh.f32 %v1694_v9  ;;  %v3138_v14 = vpop.f32.mrb[21].mxu0  ;;  %v1865_v15 = vadd.f32 %v1864_v13, %v1770_v12  ;;  %v3143_v16 = vpop.f32.mrb[21].mxu1  ;;  %v2347_v9 = vld [vmem:[%s4106_s0 + $0x3f] sm:$0x1]  ;;  %v2435_v13 = vsel %vm164_vm6, %v2434_v6, %v2433_v8 }
 0x578   :  { %v2438_v14 = vrot.slane %v2347_v9, 1 }
 0x579   :  { %v1868_v21 = vadd.f32 %v3674_v52, %v1865_v15  ;;  %v2437_v15 = vsel %vm167_vm7, %v2436_v10, %v2435_v13 }
 0x57a   :  { %v2439_v17 = vsel %vm170_vm8, %v2438_v14, %v2437_v15 }
 0x57b   :  { %3416 = vtanh.f32 %v1868_v21 }
 0x581   :  { %v3415_v30 = vpop.eup %3414 }
 0x582   :  { %3153 = vmatmul.mubr.msk.f32.vlgmr.msra.gmra.mrb[22].mxu1 %vm69_vm10, %v3415_v30 }
 0x583   :  { %3357 = vmatpush3.bf16.msra.mxu1 %v3558_v5  ;;  %3174 = vmatprep.mubr.msk.f32.mxu1 %vm3479_vm0, %v3478_v1 }
 0x584   :  { %3358 = vmatprep.subr.bf16.mxu1 %v3477_v0 }
 0x585   :  { %v3417_v35 = vpop.eup %3416 }
 0x586   :  { %3164 = vmatmul.mubr.msk.f32.vlgmr.msra.gmra.mrb[22].mxu0 %vm69_vm10, %v3417_v35 }
 0x587   :  { %3360 = vmatpush3.bf16.msra.mxu1 %v3577_v11  ;;  %3178 = vmatpush3.msk.msra.mxu0 %vm175_vm1, %v3563_v7 }
 0x588   :  { %3179 = vmatprep.mubr.msk.f32.mxu0 %vm3479_vm0, %v3478_v1  ;;  %3361 = vmatprep.subr.bf16.mxu0 %v3477_v0 }
 0x589   :  { %3367 = vmatprep.subr.bf16.mxu1 %v3477_v0 }
 0x58a   :  { %3175 = vmatmul.mubr.msk.f32.vlgmr.msra.gmra.mrb[24].mxu1 %vm69_vm10, %v3417_v35  ;;  %3180 = vmatmul.mubr.msk.f32.vlgmr.msra.gmra.mrb[24].mxu0 %vm172_vm9, %v2117_v37 }
 0x58b   :  { %3363 = vmatpush3.bf16.msra.mxu0 %v3617_v33  ;;  %3369 = vmatpush3.bf16.msra.mxu1 %v3640_v40 }
 0x58c   :  { %3364 = vmatprep.subr.bf16.mxu0 %v3477_v0  ;;  %3190 = vmatprep.mubr.msk.f32.mxu0 %vm3479_vm0, %v3478_v1 }
 0x58d   :  { %3370 = vmatprep.subr.bf16.mxu1 %v3477_v0  ;;  %3201 = vmatprep.mubr.msk.f32.mxu1 %vm3479_vm0, %v3478_v1 }
 0x58f   :  { %3366 = vmatpush3.bf16.msra.mxu0 %v3627_v36  ;;  %3372 = vmatpush3.bf16.msra.mxu1 %v3647_v42 }
 0x590   :  { %3373 = vmatprep.subr.bf16.mxu0 %v3477_v0  ;;  %3215 = vmatprep.subr.mxu1 %v3478_v1 }
 0x655   :  { %v1939_v38 = vpop.f32.mrb[22].mxu1 }
 0x656   :  { %v3154_v41 = vpop.f32.mrb[23].mxu1 }
 0x659   :  { %v2012_v45 = vpop.f32.mrb[22].mxu0 }
 0x65a   :  { %v2013_v47 = vadd.f32 %v2012_v45, %v1939_v38  ;;  %v3165_v48 = vpop.f32.mrb[23].mxu0 }
 0x65c   :  { %v2016_v51 = vadd.f32 %v3724_v19, %v2013_v47 }
 0x65d   :  { %v2092_v54 = vpop.f32.mrb[24].mxu1  ;;  %v2186_v55 = vpop.f32.mrb[24].mxu0 }
 0x65e   :  { %3418 = vtanh.f32 %v2016_v51  ;;  %v3176_v56 = vpop.f32.mrb[25].mxu1  ;;  %v2187_v57 = vadd.f32 %v2186_v55, %v2092_v54  ;;  %v3181_v58 = vpop.f32.mrb[25].mxu0 }
 0x660   :  { %v2190_v62 = vadd.f32 %v3674_v52, %v2187_v57 }
 0x662   :  { %3420 = vtanh.f32 %v2190_v62 }
 0x668   :  { %v3419_v12 = vpop.eup %3418 }
 0x669   :  { %3191 = vmatmul.mubr.msk.f32.vlgmr.msra.gmra.mrb[26].mxu0 %vm69_vm10, %v3419_v12 }
 0x66a   :  { %3375 = vmatpush3.bf16.msra.mxu0 %v3558_v5  ;;  %3212 = vmatprep.mubr.msk.f32.mxu0 %vm3479_vm0, %v3478_v1 }
 0x66b   :  { %3376 = vmatprep.subr.bf16.mxu0 %v3477_v0 }
 0x66c   :  { %v3421_v16 = vpop.eup %3420 }
 0x66d   :  { %3202 = vmatmul.mubr.msk.f32.vlgmr.msra.gmra.mrb[26].mxu1 %vm69_vm10, %v3421_v16 }
 0x66e   :  { %3378 = vmatpush3.bf16.msra.mxu0 %v3577_v11  ;;  %3216 = vmatpush3.msk.msra.mxu1 %vm175_vm1, %v3563_v7 }
 0x66f   :  { %3217 = vmatprep.mubr.msk.f32.mxu1 %vm3479_vm0, %v3478_v1  ;;  %3379 = vmatprep.subr.bf16.mxu1 %v3477_v0 }
 0x670   :  { %3385 = vmatprep.subr.bf16.mxu0 %v3477_v0 }
 0x671   :  { %3213 = vmatmul.mubr.msk.f32.vlgmr.msra.gmra.mrb[28].mxu0 %vm69_vm10, %v3421_v16  ;;  %3218 = vmatmul.mubr.msk.f32.vlgmr.msra.gmra.mrb[28].mxu1 %vm172_vm9, %v2439_v17 }
 0x672   :  { %3381 = vmatpush3.bf16.msra.mxu1 %v3617_v33  ;;  %3387 = vmatpush3.bf16.msra.mxu0 %v3640_v40 }
 0x673   :  { %3382 = vmatprep.subr.bf16.mxu1 %v3477_v0  ;;  %3228 = vmatprep.mubr.msk.f32.mxu1 %vm3479_vm0, %v3478_v1 }
 0x674   :  { %3388 = vmatprep.subr.bf16.mxu0 %v3477_v0  ;;  %3239 = vmatprep.mubr.msk.f32.mxu0 %vm3479_vm0, %v3478_v1 }
 0x676   :  { %3384 = vmatpush3.bf16.msra.mxu1 %v3627_v36  ;;  %3390 = vmatpush3.bf16.msra.mxu0 %v3647_v42 }
 0x677   :  { %3242 = vmatprep.subr.mxu1 %v3478_v1 }
 0x73c   :  { %v2261_v5 = vpop.f32.mrb[26].mxu0 }
 0x73d   :  { %v3192_v7 = vpop.f32.mrb[27].mxu0 }
 0x740   :  { %v2334_v11 = vpop.f32.mrb[26].mxu1 }
 0x741   :  { %v2335_v33 = vadd.f32 %v2334_v11, %v2261_v5  ;;  %v3203_v40 = vpop.f32.mrb[27].mxu1 }
 0x743   :  { %v2338_v18 = vadd.f32 %v3724_v19, %v2335_v33 }
 0x744   :  { %v2414_v20 = vpop.f32.mrb[28].mxu0  ;;  %v2508_v21 = vpop.f32.mrb[28].mxu1 }
 0x745   :  { %3422 = vtanh.f32 %v2338_v18  ;;  %v3214_v0 = vpop.f32.mrb[29].mxu0  ;;  %v2509_v22 = vadd.f32 %v2508_v21, %v2414_v20  ;;  %v3219_v23 = vpop.f32.mrb[29].mxu1 }
 0x747   :  { %v2512_v24 = vadd.f32 %v3674_v52, %v2509_v22  ;;  %v2662_v52 = vld [vmem:[%s4113_s7] sm:$0x1] }
 0x749   :  { %3424 = vtanh.f32 %v2512_v24 }
 0x74f   :  { %v3423_v36 = vpop.eup %3422 }
 0x750   :  { %3229 = vmatmul.mubr.msk.f32.vlgmr.msra.gmra.mrb[30].mxu1 %vm69_vm10, %v3423_v36 }
 0x751   :  { %3244 = vmatprep.mubr.msk.f32.mxu1 %vm3479_vm0, %v3478_v1  ;;  %v2664_v1 = vstv %s4114_s8 }
 0x753   :  { %v3425_v42 = vpop.eup %3424 }
 0x754   :  { %3240 = vmatmul.mubr.msk.f32.vlgmr.msra.gmra.mrb[30].mxu0 %vm69_vm10, %v3425_v42 }
 0x823   :  { %v2583_v25 = vpop.f32.mrb[30].mxu1 }
 0x824   :  { %v3230_v26 = vpop.f32.mrb[31].mxu1 }
 0x827   :  { %v2656_v27 = vpop.f32.mrb[30].mxu0 }
 0x828   :  { %v2657_v28 = vadd.f32 %v2656_v27, %v2583_v25  ;;  %v3241_v29 = vpop.f32.mrb[31].mxu0 }
 0x82a   :  { %v2660_v30 = vadd.f32 %v3724_v19, %v2657_v28 }
 0x82c   :  { %3426 = vtanh.f32 %v2660_v30 }
 0x836   :  { %v3427_v31 = vpop.eup %3426 }
 0x837   :  { %3243 = vmatpush3.xpose.msk.msra.mxu1 %vm69_vm10, %v3427_v31 }
 0x83a   :  { %3245 = vmatmul.mubr.msk.f32.vlgmr.msra.gmra.mrb[32].mxu1 %vm69_vm10, %v2662_v52 }
 0x90d   :  { %v2737_v32 = vpop.f32.mrb[32].mxu1 }
 0x90e   :  { %v2738_v34 = vadd.f32 %v2737_v32, %v2664_v1  ;;  %v3246_v19 = vpop.f32.mrb[33].mxu1 }
 0x910   :  { %2742 = vst.msk [vmem:[#allocation6] sm:$0x1] %vm2741_vm11, %v2738_v34 }
 0x911   :  { %3461 = shalt.err (!%p3458_p12)
}
 0x912   :  { %s3462_s8 = scalar_lea.hbm %s4115_s9, 16 }
 0x913   :  { %p3463_p13 = scmp.ne.s32.totalorder %s4115_s9, %s3462_s8  ;;  %p3466_p0 = scmp.lt.u32.totalorder %s3462_s8, %s4115_s9 }
 0x915   :  { %p3468_p1 = pnand %p3466_p0, %p3463_p13 }
 0x917   :  { %3471 = shalt.err (!%p3468_p1)
}
 0x918   :  { %2752 = dma.vmem_to_hbm [thread:$0]  %s2750_s24, 16, %s4115_s9, [#allocation5]  }
 0x919   :  { %3474 = dma.done.wait [#allocation5], 16  }
 0x91a   :  { %3475 = vsyncadd [#allocation5], 4294967280 }
 0x91b   :  { %2756 = vsyncpa [#allocation4], 1 }
 0x91c   :  { %2757 = vsyncpa [#allocation5], 1 }

</bundles_post_ra>
